<compile_context>
chip_gen: v7x
topology: tpu7x:2x2x1
jax: 0.10.0
libtpu: 0.0.40
codegen_flags: <defaults>
</compile_context>

<pallas_src>
import jax
import jax.numpy as jnp
from jax.experimental import pallas as pl
from jax.experimental.pallas import tpu as pltpu


# 48 MiB scoped-VMEM limit is safe on every generation (v7x has 64 MiB/TC).
# On v5e/v6e (128 MiB) this could be raised to ~96 MiB, but the kernel is
# weight-HBM bound and already near roofline at these tile sizes.
_VMEM_LIMIT = 48 * 1024 * 1024
_TILE_BUDGET = 40 * 1024 * 1024   # double-buffered tile working set must fit


def _round_up(x, m):
    return ((x + m - 1) // m) * m


def _pick_tile(dim_aligned, align, cap):
    """Largest multiple of `align` that divides `dim_aligned` and is <= cap."""
    cap = max(align, min(cap, dim_aligned))
    t = (cap // align) * align
    while dim_aligned % t:
        t -= align
    return t


def _choose_tiles(B_p, n_out_p, n_in_p, x_itemsize):
    # Weight streaming from HBM is the roofline: prefer big (tk, tn) weight
    # tiles; grow tm with B so W is re-streamed as few times as possible.
    tk = _pick_tile(n_in_p, 128, 2048)
    tn = _pick_tile(n_out_p, 128, 2048)
    tm = _pick_tile(B_p, 8, 512)

    def working_set(tm_, tn_, tk_):
        # double-buffered x / W(bf16) / out(f32) tiles + bias row.
        return (2 * tm_ * tk_ * x_itemsize + 2 * tk_ * tn_ * 2
                + 2 * tm_ * tn_ * 4 + 2 * tn_ * 4)

    while working_set(tm, tn, tk) > _TILE_BUDGET and tm > 8:
        tm = _pick_tile(B_p, 8, tm // 2)
    while working_set(tm, tn, tk) > _TILE_BUDGET and tn > 128:
        tn = _pick_tile(n_out_p, 128, tn // 2)
    while working_set(tm, tn, tk) > _TILE_BUDGET and tk > 128:
        tk = _pick_tile(n_in_p, 128, tk // 2)

    # v7x has 2 TensorCores: ensure the (i, j) parallel grid has >= 2 tiles
    # when the batch is big enough to split (neutral on v5e/v6e).
    if (B_p // tm) * (n_out_p // tn) == 1 and B_p >= 16:
        tm = _pick_tile(B_p, 8, tm // 2)
    return tm, tn, tk


def _fc_sigmoid_kernel(x_ref, w_ref, b_ref, o_ref):
    # x_ref: (tm, tk) f32   w_ref: (tk, tn) bf16   b_ref: (1, tn) f32
    # o_ref: (tm, tn) f32 -- resident across the K axis (acts as accumulator).
    k = pl.program_id(2)

    # In-kernel cast of the x tile rides the VPU slot and hides under the
    # weight DMA (the real bottleneck); accumulation stays f32.
    partial = jnp.dot(x_ref[...].astype(w_ref.dtype), w_ref[...],
                      preferred_element_type=jnp.float32)

    @pl.when(k == 0)
    def _first():
        o_ref[...] = partial

    @pl.when(k > 0)
    def _accum():
        o_ref[...] += partial

    @pl.when(k == pl.num_programs(2) - 1)
    def _finalize():
        # Bias add + sigmoid once per output tile, in f32 (EUP; safe on v5e).
        o_ref[...] = jax.nn.sigmoid(o_ref[...] + b_ref[...])


def prepare_fc_params(w, b, matmul_dtype=jnp.bfloat16):
    """One-time (init-time) pad + cast of the nn.Linear parameters.

    w: (n_in, n_out)  (transpose of torch's (n_out, n_in) weight)
    b: (n_out,)
    Returns (w_padded_bf16, b_padded_f32_row, n_in, n_out).
    """
    n_in, n_out = w.shape
    n_in_p = _round_up(n_in, 128)
    n_out_p = _round_up(n_out, 128)
    w_p = jnp.pad(w.astype(matmul_dtype),
                  ((0, n_in_p - n_in), (0, n_out_p - n_out)))
    b_p = jnp.pad(b.astype(jnp.float32), (0, n_out_p - n_out)).reshape(1, n_out_p)
    return w_p, b_p, n_in, n_out


def fully_connected_layer(x, params, p_dropout=0.0):
    """Forward pass of FullyConnectedLayer.

    x: (B, C, H, W) or already-flat (B, n_in), any float dtype (kept as-is)
    params: output of prepare_fc_params (padded/cast once at init).
    Returns f32 (B, n_out).
    """
    # Dropout with p=0.0 (module default) / eval mode is the identity.
    assert p_dropout == 0.0, "train-mode dropout not implemented"
    # TODO(synk): implement train-mode inverted dropout via pltpu.prng_* for p_dropout > 0.

    w_p, b_p, n_in, n_out = params
    n_in_p, n_out_p = w_p.shape

    B = x.shape[0]
    x2d = x.reshape(B, -1)
    assert x2d.shape[1] == n_in

    # Pad x only when needed (B to sublane multiple of 8, n_in to lane 128).
    B_p = _round_up(B, 8)
    if (B_p, n_in_p) != x2d.shape:
        x2d = jnp.pad(x2d, ((0, B_p - B), (0, n_in_p - n_in)))

    tm, tn, tk = _choose_tiles(B_p, n_out_p, n_in_p, x2d.dtype.itemsize)
    grid = (B_p // tm, n_out_p // tn, n_in_p // tk)
    k_steps = grid[2]

    # Weight BlockSpec ignores i, so W is streamed once per M tile; with tiny
    # per-tile compute (small tm) and many K steps, a third buffer keeps the
    # HBM stream saturated across K-step boundaries.
    if tm <= 64 and k_steps >= 3:
        w_spec = pl.BlockSpec((tk, tn), lambda i, j, k: (k, j),
                              pipeline_mode=pl.Buffered(3))
    else:
        w_spec = pl.BlockSpec((tk, tn), lambda i, j, k: (k, j))

    num_m_tiles = grid[0]
    cost = pl.CostEstimate(
        flops=2 * B_p * n_in_p * n_out_p,
        transcendentals=B_p * n_out_p,
        bytes_accessed=(B_p * n_in_p * x2d.dtype.itemsize
                        + num_m_tiles * n_in_p * n_out_p * w_p.dtype.itemsize
                        + B_p * n_out_p * 4
                        + n_out_p * 4),
    )

    out_p = pl.pallas_call(
        _fc_sigmoid_kernel,
        out_shape=jax.ShapeDtypeStruct((B_p, n_out_p), jnp.float32),
        grid_spec=pltpu.PrefetchScalarGridSpec(
            num_scalar_prefetch=0,
            grid=grid,
            in_specs=[
                pl.BlockSpec((tm, tk), lambda i, j, k: (i, k)),
                w_spec,
                pl.BlockSpec((1, tn), lambda i, j, k: (0, j)),
            ],
            out_specs=pl.BlockSpec((tm, tn), lambda i, j, k: (i, j)),
        ),
        compiler_params=pltpu.CompilerParams(
            dimension_semantics=("parallel", "parallel", "arbitrary"),
            vmem_limit_bytes=_VMEM_LIMIT,
        ),
        cost_estimate=cost,
    )(x2d, w_p, b_p)

    return out_p[:B, :n_out]


if __name__ == "__main__":
    key = jax.random.PRNGKey(0)
    k_x, k_w, k_b = jax.random.split(key, 3)

    # Small shapes consistent with the module: NCHW input flattened to n_in.
    B, C, H, W = 2, 4, 16, 16          # n_in = 4*16*16 = 1024
    n_in = C * H * W
    n_out = 32

    x = jax.random.normal(k_x, (B, C, H, W), dtype=jnp.float32)
    # nn.Linear-style params: weight (n_out, n_in), bias (n_out,)
    bound = 1.0 / (n_in ** 0.5)
    w_torch_layout = jax.random.uniform(k_w, (n_out, n_in), minval=-bound, maxval=bound)
    b_param = jax.random.uniform(k_b, (n_out,), minval=-bound, maxval=bound)
    w = jnp.transpose(w_torch_layout)           # (n_in, n_out) for x @ W

    # One-time parameter prep: pad + bf16 cast hoisted out of the call path.
    params = prepare_fc_params(w, b_param)

    out = fully_connected_layer(x, params)
    jax.block_until_ready(out)

    # Sanity check against plain-JAX f32 reference (bf16 matmul operands ->
    # modest tolerance; sigmoid output is bounded in [0, 1]).
    ref = jax.nn.sigmoid(x.reshape(B, -1) @ w + b_param)
    assert out.shape == (B, n_out)
    assert jnp.allclose(out, ref, atol=5e-3, rtol=1e-2), (
        float(jnp.max(jnp.abs(out - ref))))

    print("KERNEL_OK")
</pallas_src>

<mosaic_0001>
module attributes {stable_mosaic.version = 11 : i64} {
  func.func @_fc_sigmoid_kernel(%arg0: i32, %arg1: i32, %arg2: i32, %arg3: memref<8x1024xf32, #tpu.memory_space<vmem>>, %arg4: memref<1024x128xbf16, #tpu.memory_space<vmem>>, %arg5: memref<1x128xf32, #tpu.memory_space<vmem>>, %arg6: memref<8x128xf32, #tpu.memory_space<vmem>>) attributes {dimension_semantics = [#tpu.dimension_semantics<parallel>, #tpu.dimension_semantics<parallel>, #tpu.dimension_semantics<arbitrary>], iteration_bounds = array<i64: 1, 1, 1>, scalar_prefetch = 0 : i64, scratch_operands = 0 : i64, tpu.core_type = #tpu.core_type<tc>, window_params = [{transform_indices = @transform_0, window_bounds = array<i64: 8, 1024>}, {transform_indices = @transform_1, window_bounds = array<i64: 1024, 128>}, {transform_indices = @transform_2, window_bounds = array<i64: 1, 128>}, {transform_indices = @transform_3, window_bounds = array<i64: 8, 128>}]} {
    %c0 = arith.constant 0 : index
    %c0_0 = arith.constant 0 : index
    %0 = vector.load %arg3[%c0, %c0_0] : memref<8x1024xf32, #tpu.memory_space<vmem>>, vector<8x1024xf32>
    %1 = arith.truncf %0 : vector<8x1024xf32> to vector<8x1024xbf16>
    %c0_1 = arith.constant 0 : index
    %c0_2 = arith.constant 0 : index
    %2 = vector.load %arg4[%c0_1, %c0_2] : memref<1024x128xbf16, #tpu.memory_space<vmem>>, vector<1024x128xbf16>
    %cst = arith.constant dense<0.000000e+00> : vector<8x128xf32>
    %3 = tpu.matmul %1, %2, %cst {dimension_numbers = #tpu.dot_dimension_numbers<[1], [0], [0], [1], [0, 0, 1, 1], [], []>} : vector<8x1024xbf16>, vector<1024x128xbf16>, vector<8x128xf32> -> vector<8x128xf32>
    %c0_i32 = arith.constant 0 : i32
    %4 = arith.cmpi eq, %arg2, %c0_i32 : i32
    %5 = arith.extui %4 : i1 to i32
    %c0_i32_3 = arith.constant 0 : i32
    %6 = arith.cmpi ne, %5, %c0_i32_3 : i32
    scf.if %6 {
      %c0_8 = arith.constant 0 : index
      %c0_9 = arith.constant 0 : index
      %13 = vector.load %arg6[%c0_8, %c0_9] : memref<8x128xf32, #tpu.memory_space<vmem>>, vector<8x128xf32>
      tpu.vector_store %arg6[%c0_8, %c0_9], %3 {strides = array<i32>} : memref<8x128xf32, #tpu.memory_space<vmem>>, vector<8x128xf32>,
    } else {
    }
    %c0_i32_4 = arith.constant 0 : i32
    %7 = arith.cmpi sgt, %arg2, %c0_i32_4 : i32
    %8 = arith.extui %7 : i1 to i32
    %c0_i32_5 = arith.constant 0 : i32
    %9 = arith.cmpi ne, %8, %c0_i32_5 : i32
    scf.if %9 {
      %c0_8 = arith.constant 0 : index
      %c0_9 = arith.constant 0 : index
      %13 = vector.load %arg6[%c0_8, %c0_9] : memref<8x128xf32, #tpu.memory_space<vmem>>, vector<8x128xf32>
      %14 = arith.addf %13, %3 : vector<8x128xf32>
      %c0_10 = arith.constant 0 : index
      %c0_11 = arith.constant 0 : index
      %15 = vector.load %arg6[%c0_10, %c0_11] : memref<8x128xf32, #tpu.memory_space<vmem>>, vector<8x128xf32>
      tpu.vector_store %arg6[%c0_10, %c0_11], %14 {strides = array<i32>} : memref<8x128xf32, #tpu.memory_space<vmem>>, vector<8x128xf32>,
    } else {
    }
    %c0_i32_6 = arith.constant 0 : i32
    %10 = arith.cmpi eq, %arg2, %c0_i32_6 : i32
    %11 = arith.extui %10 : i1 to i32
    %c0_i32_7 = arith.constant 0 : i32
    %12 = arith.cmpi ne, %11, %c0_i32_7 : i32
    scf.if %12 {
      %c0_8 = arith.constant 0 : index
      %c0_9 = arith.constant 0 : index
      %13 = vector.load %arg6[%c0_8, %c0_9] : memref<8x128xf32, #tpu.memory_space<vmem>>, vector<8x128xf32>
      %c0_10 = arith.constant 0 : index
      %c0_11 = arith.constant 0 : index
      %14 = vector.load %arg5[%c0_10, %c0_11] : memref<1x128xf32, #tpu.memory_space<vmem>>, vector<1x128xf32>
      %15 = vector.broadcast %14 : vector<1x128xf32> to vector<8x128xf32>
      %16 = arith.addf %13, %15 : vector<8x128xf32>
      %17 = arith.negf %16 : vector<8x128xf32>
      %18 = math.exp %17 : vector<8x128xf32>
      %cst_12 = arith.constant 1.000000e+00 : f32
      %19 = vector.broadcast %cst_12 : f32 to vector<8x128xf32>
      %20 = arith.addf %19, %18 : vector<8x128xf32>
      %21 = arith.divf %19, %20 : vector<8x128xf32>
      %c0_13 = arith.constant 0 : index
      %c0_14 = arith.constant 0 : index
      %22 = vector.load %arg6[%c0_13, %c0_14] : memref<8x128xf32, #tpu.memory_space<vmem>>, vector<8x128xf32>
      tpu.vector_store %arg6[%c0_13, %c0_14], %21 {strides = array<i32>} : memref<8x128xf32, #tpu.memory_space<vmem>>, vector<8x128xf32>,
    } else {
    }
    return
  }
  func.func @transform_0(%arg0: i32, %arg1: i32, %arg2: i32) -> (i32, i32) {
    %c0_i32 = arith.constant 0 : i32
    return %arg0, %arg2 : i32, i32
  }
  func.func @transform_1(%arg0: i32, %arg1: i32, %arg2: i32) -> (i32, i32) {
    %c0_i32 = arith.constant 0 : i32
    return %arg2, %arg1 : i32, i32
  }
  func.func @transform_2(%arg0: i32, %arg1: i32, %arg2: i32) -> (i32, i32) {
    %c0_i32 = arith.constant 0 : i32
    %c0_i32_0 = arith.constant 0 : i32
    return %c0_i32, %arg1 : i32, i32
  }
  func.func @transform_3(%arg0: i32, %arg1: i32, %arg2: i32) -> (i32, i32) {
    %c0_i32 = arith.constant 0 : i32
    return %arg0, %arg1 : i32, i32
  }
}

</mosaic_0001>

<bundles_post_ra>
// kernel: tpu_custom_call.1
= control target key start
LH: loop header
LB: loop body
LE: loop exit
PB: predicated region body
PF: predicated region fallthrough
CT: control target
= control target key end

     0   :  { %8 = vsyncpa [#allocation3], 0  ;;  %s1147_s0 = inlined_call_operand.hbm [shape: f32[8,1024], index: 0, kind: input, shape index: {}]   ;;  %s1148_s1 = inlined_call_operand.hbm [shape: bf16[1024,128], index: 1, kind: input, shape index: {}]   ;;  %s1149_s2 = inlined_call_operand.vmem [shape: f32[1,128], index: 2, kind: input, shape index: {}]   ;;  %s1150_s3 = inlined_call_operand.hbm [shape: f32[8,128], index: 3, kind: output, shape index: {}]  }
   0x1   :  { %9 = vsyncpa [#allocation6], 0 }
   0x2   :  { %10 = vsyncpa [#allocation4], 0  ;;  %s1076_s12 = smov [#allocation2]   ;;  %s1077_s14 = smov [#allocation5]  }
   0x3   :  { %s17_s13 = sshll.u32 %s1076_s12, 4  ;;  %s26_s15 = sshll.u32 %s1077_s14, 4  ;;  %s18_s13 = int_to_ptr.vmem [resolvable:$true] %s17_s13  ;;  %s1101_s15 = int_to_ptr.vmem [resolvable:$true] %s26_s15 }
   0x4   :  { %s1004_s18 = scalar_lea.hbm %s1147_s0, 1024 }
   0x5   :  { %p1005_p0 = scmp.ne.s32.totalorder %s1147_s0, %s1004_s18  ;;  %p1008_p1 = scmp.lt.u32.totalorder %s1004_s18, %s1147_s0 }
   0x7   :  { %p1010_p2 = pnand %p1008_p1, %p1005_p0 }
   0x9   :  { %1013 = shalt.err (!%p1010_p2)
}
   0xa   :  { %s1014_s23 = scalar_lea.vmem %s18_s13, 1024  ;;  %p1019_p4 = scmp.lt.s32.totalorder %s18_s13, %s18_s13 }
   0xb   :  { %p1015_p3 = scmp.ne.s32.totalorder %s18_s13, %s1014_s23  ;;  %p1020_p5 = scmp.lt.s32.totalorder %s1014_s23, %s1014_s23 }
   0xd   :  { %p1021_p6 = por %p1020_p5, %p1019_p4 }
   0xf   :  { %p1022_p7 = pnand %p1021_p6, %p1015_p3 }
  0x11   :  { %1025 = shalt.err (!%p1022_p7)
}
  0x12   :  { %20 = dma.hbm_to_vmem [thread:$0]  %s1147_s0, 1024, %s18_s13, [#allocation3]  }
  0x13   :  { %s1026_s28 = scalar_lea.hbm %s1148_s1, 8192 }
  0x14   :  { %p1027_p8 = scmp.ne.s32.totalorder %s1148_s1, %s1026_s28  ;;  %p1030_p9 = scmp.lt.u32.totalorder %s1026_s28, %s1148_s1 }
  0x16   :  { %p1032_p10 = pnand %p1030_p9, %p1027_p8 }
  0x18   :  { %1035 = shalt.err (!%p1032_p10)
}
  0x19   :  { %s1036_s6 = scalar_lea.vmem %s1101_s15, 8192  ;;  %p1041_p12 = scmp.lt.s32.totalorder %s1101_s15, %s1101_s15 }
  0x1a   :  { %p1037_p11 = scmp.ne.s32.totalorder %s1101_s15, %s1036_s6  ;;  %p1042_p13 = scmp.lt.s32.totalorder %s1036_s6, %s1036_s6 }
  0x1c   :  { %p1043_p0 = por %p1042_p13, %p1041_p12 }
  0x1e   :  { %p1044_p1 = pnand %p1043_p0, %p1037_p11 }
  0x20   :  { %1047 = shalt.err (!%p1044_p1)
}
  0x21   :  { %s1078_s0 = smov 64   ;;  %s1079_s7 = smov 4  }
  0x22   :  { %32 = dma.hbm_to_vmem [thread:$0]  %s1148_s1, 8192, %s1101_s15, [#allocation6], %s1078_s0, %s1078_s0, %s1079_s7  }
  0x23   :  { %1070 = dma.done.wait [#allocation3], 1024  }
  0x24   :  { %1071 = vsyncadd [#allocation3], 4294966272 }
  0x25   :  { %1072 = dma.done.wait [#allocation6], 8192  }
  0x26   :  { %1073 = vsyncadd [#allocation6], 4294959104  ;;  %v936_v0 = vld [vmem:[#allocation5 + $0x40] sm:$0xff]   ;;  %v940_v4 = vld [vmem:[#allocation5 + $0x48] sm:$0xff]   ;;  %s1080_s11 = smov [#allocation7]  }
  0x27   :  { %v937_v1 = vld [vmem:[#allocation5 + $0xc0] sm:$0xff]   ;;  %843 = vmatprep.subr.bf16.mxu0 %v936_v0  ;;  %v941_v5 = vld [vmem:[#allocation5 + $0xc8] sm:$0xff]   ;;  %v944_v8 = vld [vmem:[#allocation5 + $0x50] sm:$0xff]   ;;  %s767_s12 = sshll.u32 %s1080_s11, 4  ;;  %s768_s12 = int_to_ptr.vmem [resolvable:$true] %s767_s12 }
  0x28   :  { %v938_v2 = vld [vmem:[#allocation5] sm:$0xff]   ;;  %865 = vmatprep.subr.bf16.mxu1 %v937_v1  ;;  %v942_v6 = vld [vmem:[#allocation5 + $0x8] sm:$0xff]   ;;  %v945_v9 = vld [vmem:[#allocation5 + $0xd0] sm:$0xff]   ;;  %s1048_s13 = scalar_lea.vmem %s768_s12, 128  ;;  %p1053_p3 = scmp.lt.s32.totalorder %s768_s12, %s768_s12 }
  0x29   :  { %v939_v3 = vld [vmem:[#allocation5 + $0x80] sm:$0xff]   ;;  %844 = vmatpush3.bf16.msra.mxu0 %v938_v2  ;;  %v943_v7 = vld [vmem:[#allocation5 + $0x88] sm:$0xff]   ;;  %v946_v10 = vld [vmem:[#allocation5 + $0x10] sm:$0xff]   ;;  %p1049_p2 = scmp.ne.s32.totalorder %s768_s12, %s1048_s13  ;;  %p1054_p4 = scmp.lt.s32.totalorder %s1048_s13, %s1048_s13 }
  0x2a   :  { %866 = vmatpush3.bf16.msra.mxu1 %v939_v3  ;;  %845 = vmatprep.subr.bf16.mxu0 %v940_v4  ;;  %v947_v11 = vld [vmem:[#allocation5 + $0x90] sm:$0xff]   ;;  %v948_v12 = vld [vmem:[#allocation5 + $0x58] sm:$0xff]   ;;  %v952_v16 = vld [vmem:[#allocation5 + $0x60] sm:$0xff]  }
  0x2b   :  { %867 = vmatprep.subr.bf16.mxu1 %v941_v5  ;;  %v949_v13 = vld [vmem:[#allocation5 + $0xd8] sm:$0xff]   ;;  %v953_v17 = vld [vmem:[#allocation5 + $0xe0] sm:$0xff]   ;;  %v956_v20 = vld [vmem:[#allocation5 + $0x68] sm:$0xff]   ;;  %p1055_p5 = por %p1054_p4, %p1053_p3 }
  0x2c   :  { %v950_v14 = vld [vmem:[#allocation5 + $0x18] sm:$0xff]   ;;  %v954_v18 = vld [vmem:[#allocation5 + $0x20] sm:$0xff]   ;;  %v957_v21 = vld [vmem:[#allocation5 + $0xe8] sm:$0xff]  }
  0x2d   :  { %846 = vmatpush3.bf16.msra.mxu0 %v942_v6  ;;  %v951_v15 = vld [vmem:[#allocation5 + $0x98] sm:$0xff]   ;;  %v955_v19 = vld [vmem:[#allocation5 + $0xa0] sm:$0xff]   ;;  %v958_v22 = vld [vmem:[#allocation5 + $0x28] sm:$0xff]   ;;  %p1056_p6 = pnand %p1055_p5, %p1049_p2 }
  0x2e   :  { %868 = vmatpush3.bf16.msra.mxu1 %v943_v7  ;;  %847 = vmatprep.subr.bf16.mxu0 %v944_v8  ;;  %v959_v23 = vld [vmem:[#allocation5 + $0xa8] sm:$0xff]   ;;  %v960_v24 = vld [vmem:[#allocation5 + $0x70] sm:$0xff]   ;;  %v964_v28 = vld [vmem:[#allocation5 + $0x78] sm:$0xff]  }
  0x2f   :  { %869 = vmatprep.subr.bf16.mxu1 %v945_v9  ;;  %v961_v25 = vld [vmem:[#allocation5 + $0xf0] sm:$0xff]   ;;  %v965_v29 = vld [vmem:[#allocation5 + $0xf8] sm:$0xff]   ;;  %v43_v32 = vld [vmem:[#allocation2 + $0x8] sm:$0xff] }
  0x30   :  { %v962_v26 = vld [vmem:[#allocation5 + $0x30] sm:$0xff]   ;;  %v966_v30 = vld [vmem:[#allocation5 + $0x38] sm:$0xff]   ;;  %v42_v34 = vld [vmem:[#allocation2] sm:$0xff]  ;;  %v51_v35 = vpack.c.bf16 %v43_v32, %v43_v32 }
  0x31   :  { %848 = vmatpush3.bf16.msra.mxu0 %v946_v10  ;;  %v963_v27 = vld [vmem:[#allocation5 + $0xb0] sm:$0xff]   ;;  %v967_v31 = vld [vmem:[#allocation5 + $0xb8] sm:$0xff]   ;;  %v50_v37 = vpack.c.bf16 %v42_v34, %v42_v34  ;;  %v968_v40 = vld [vmem:[#allocation5 + $0x140] sm:$0xff]  }
  0x32   :  { %870 = vmatpush3.bf16.msra.mxu1 %v947_v11  ;;  %849 = vmatprep.subr.bf16.mxu0 %v948_v12  ;;  %v45_v33 = vld [vmem:[#allocation2 + $0x18] sm:$0xff]  ;;  %v44_v38 = vld [vmem:[#allocation2 + $0x10] sm:$0xff]  ;;  %v969_v41 = vld [vmem:[#allocation5 + $0x1c0] sm:$0xff]  }
  0x33   :  { %871 = vmatprep.subr.bf16.mxu1 %v949_v13  ;;  %v53_v36 = vpack.c.bf16 %v45_v33, %v45_v33  ;;  %v52_v39 = vpack.c.bf16 %v44_v38, %v44_v38  ;;  %602 = vmatprep.mubr.bf16.mxu0 %v51_v35  ;;  %v970_v42 = vld [vmem:[#allocation5 + $0x100] sm:$0xff]   ;;  %v972_v44 = vld [vmem:[#allocation5 + $0x148] sm:$0xff]   ;;  %v976_v48 = vld [vmem:[#allocation5 + $0x150] sm:$0xff]  }
  0x34   :  { %v971_v43 = vld [vmem:[#allocation5 + $0x180] sm:$0xff]   ;;  %v973_v45 = vld [vmem:[#allocation5 + $0x1c8] sm:$0xff]   ;;  %v977_v49 = vld [vmem:[#allocation5 + $0x1d0] sm:$0xff]  }
  0x35   :  { %850 = vmatpush3.bf16.msra.mxu0 %v950_v14  ;;  %642 = vmatprep.mubr.bf16.mxu1 %v53_v36  ;;  %v974_v46 = vld [vmem:[#allocation5 + $0x108] sm:$0xff]   ;;  %v978_v50 = vld [vmem:[#allocation5 + $0x110] sm:$0xff]   ;;  %v980_v52 = vld [vmem:[#allocation5 + $0x158] sm:$0xff]  }
  0x36   :  { %872 = vmatpush3.bf16.msra.mxu1 %v951_v15  ;;  %851 = vmatprep.subr.bf16.mxu0 %v952_v16  ;;  %v975_v47 = vld [vmem:[#allocation5 + $0x188] sm:$0xff]   ;;  %v979_v51 = vld [vmem:[#allocation5 + $0x190] sm:$0xff]   ;;  %v981_v53 = vld [vmem:[#allocation5 + $0x1d8] sm:$0xff]  }
  0x37   :  { %873 = vmatprep.subr.bf16.mxu1 %v953_v17  ;;  %v982_v54 = vld [vmem:[#allocation5 + $0x118] sm:$0xff]   ;;  %v984_v56 = vld [vmem:[#allocation5 + $0x160] sm:$0xff]   ;;  %v988_v60 = vld [vmem:[#allocation5 + $0x168] sm:$0xff]  }
  0x38   :  { %v983_v55 = vld [vmem:[#allocation5 + $0x198] sm:$0xff]   ;;  %v985_v57 = vld [vmem:[#allocation5 + $0x1e0] sm:$0xff]   ;;  %v989_v61 = vld [vmem:[#allocation5 + $0x1e8] sm:$0xff]  }
  0x39   :  { %852 = vmatpush3.bf16.msra.mxu0 %v954_v18  ;;  %v986_v58 = vld [vmem:[#allocation5 + $0x120] sm:$0xff]   ;;  %v990_v62 = vld [vmem:[#allocation5 + $0x128] sm:$0xff]   ;;  %v992_v0 = vld [vmem:[#allocation5 + $0x170] sm:$0xff]  }
  0x3a   :  { %874 = vmatpush3.bf16.msra.mxu1 %v955_v19  ;;  %853 = vmatprep.subr.bf16.mxu0 %v956_v20  ;;  %v987_v59 = vld [vmem:[#allocation5 + $0x1a0] sm:$0xff]   ;;  %v991_v63 = vld [vmem:[#allocation5 + $0x1a8] sm:$0xff]   ;;  %v993_v1 = vld [vmem:[#allocation5 + $0x1f0] sm:$0xff]  }
  0x3b   :  { %875 = vmatprep.subr.bf16.mxu1 %v957_v21  ;;  %v994_v2 = vld [vmem:[#allocation5 + $0x130] sm:$0xff]   ;;  %v996_v4 = vld [vmem:[#allocation5 + $0x178] sm:$0xff]   ;;  %v47_v8 = vld [vmem:[#allocation2 + $0x28] sm:$0xff] }
  0x3c   :  { %v995_v3 = vld [vmem:[#allocation5 + $0x1b0] sm:$0xff]   ;;  %v997_v5 = vld [vmem:[#allocation5 + $0x1f8] sm:$0xff]   ;;  %v55_v10 = vpack.c.bf16 %v47_v8, %v47_v8  ;;  %v46_v12 = vld [vmem:[#allocation2 + $0x20] sm:$0xff] }
  0x3d   :  { %854 = vmatpush3.bf16.msra.mxu0 %v958_v22  ;;  %v998_v6 = vld [vmem:[#allocation5 + $0x138] sm:$0xff]   ;;  %v48_v13 = vld [vmem:[#allocation2 + $0x30] sm:$0xff]  ;;  %v54_v14 = vpack.c.bf16 %v46_v12, %v46_v12  ;;  %v841_v38 = vld [vmem:[%s1149_s2] ss:$0 sm:$0xff] }
  0x3e   :  { %876 = vmatpush3.bf16.msra.mxu1 %v959_v23  ;;  %855 = vmatprep.subr.bf16.mxu0 %v960_v24  ;;  %v999_v7 = vld [vmem:[#allocation5 + $0x1b8] sm:$0xff]   ;;  %v56_v15 = vpack.c.bf16 %v48_v13, %v48_v13 }
  0x3f   :  { %877 = vmatprep.subr.bf16.mxu1 %v961_v25  ;;  %v49_v9 = vld [vmem:[#allocation2 + $0x38] sm:$0xff] }
  0x40   :  { %v57_v11 = vpack.c.bf16 %v49_v9, %v49_v9 }
  0x41   :  { %856 = vmatpush3.bf16.msra.mxu0 %v962_v26 }
  0x42   :  { %878 = vmatpush3.bf16.msra.mxu1 %v963_v27  ;;  %857 = vmatprep.subr.bf16.mxu0 %v964_v28 }
  0x43   :  { %879 = vmatprep.subr.bf16.mxu1 %v965_v29 }
  0x45   :  { %858 = vmatpush3.bf16.msra.mxu0 %v966_v30 }
  0x46   :  { %880 = vmatpush3.bf16.msra.mxu1 %v967_v31  ;;  %887 = vmatprep.subr.bf16.mxu0 %v968_v40 }
  0x47   :  { %909 = vmatprep.subr.bf16.mxu1 %v969_v41 }
  0x48   :  { %603 = vmatmul.mubr.bf16.vlgmr.msra.gmra.mrb[0].mxu0 %v50_v37 }
  0x49   :  { %643 = vmatmul.mubr.bf16.vlgmr.msra.gmra.mrb[0].mxu1 %v52_v39  ;;  %888 = vmatpush3.bf16.msra.mxu0 %v970_v42 }
  0x4a   :  { %910 = vmatpush3.bf16.msra.mxu1 %v971_v43  ;;  %889 = vmatprep.subr.bf16.mxu0 %v972_v44 }
  0x4b   :  { %911 = vmatprep.subr.bf16.mxu1 %v973_v45  ;;  %682 = vmatprep.mubr.bf16.mxu0 %v55_v10 }
  0x4c   :  { %722 = vmatprep.mubr.bf16.mxu1 %v57_v11 }
  0x4d   :  { %890 = vmatpush3.bf16.msra.mxu0 %v974_v46 }
  0x4e   :  { %912 = vmatpush3.bf16.msra.mxu1 %v975_v47  ;;  %891 = vmatprep.subr.bf16.mxu0 %v976_v48 }
  0x4f   :  { %913 = vmatprep.subr.bf16.mxu1 %v977_v49 }
  0x51   :  { %892 = vmatpush3.bf16.msra.mxu0 %v978_v50 }
  0x52   :  { %914 = vmatpush3.bf16.msra.mxu1 %v979_v51  ;;  %893 = vmatprep.subr.bf16.mxu0 %v980_v52 }
  0x53   :  { %915 = vmatprep.subr.bf16.mxu1 %v981_v53 }
  0x55   :  { %894 = vmatpush3.bf16.msra.mxu0 %v982_v54 }
  0x56   :  { %916 = vmatpush3.bf16.msra.mxu1 %v983_v55  ;;  %895 = vmatprep.subr.bf16.mxu0 %v984_v56 }
  0x57   :  { %917 = vmatprep.subr.bf16.mxu1 %v985_v57 }
  0x59   :  { %896 = vmatpush3.bf16.msra.mxu0 %v986_v58 }
  0x5a   :  { %918 = vmatpush3.bf16.msra.mxu1 %v987_v59  ;;  %897 = vmatprep.subr.bf16.mxu0 %v988_v60 }
  0x5b   :  { %919 = vmatprep.subr.bf16.mxu1 %v989_v61 }
  0x5d   :  { %898 = vmatpush3.bf16.msra.mxu0 %v990_v62 }
  0x5e   :  { %920 = vmatpush3.bf16.msra.mxu1 %v991_v63  ;;  %899 = vmatprep.subr.bf16.mxu0 %v992_v0 }
  0x5f   :  { %921 = vmatprep.subr.bf16.mxu1 %v993_v1 }
  0x61   :  { %900 = vmatpush3.bf16.msra.mxu0 %v994_v2 }
  0x62   :  { %922 = vmatpush3.bf16.msra.mxu1 %v995_v3  ;;  %901 = vmatprep.subr.bf16.mxu0 %v996_v4 }
  0x63   :  { %923 = vmatprep.subr.bf16.mxu1 %v997_v5 }
  0x65   :  { %902 = vmatpush3.bf16.msra.mxu0 %v998_v6 }
  0x66   :  { %924 = vmatpush3.bf16.msra.mxu1 %v999_v7 }
  0x68   :  { %683 = vmatmul.mubr.bf16.vlgmr.msra.gmra.mrb[4].mxu0 %v54_v14 }
  0x69   :  { %723 = vmatmul.mubr.bf16.vlgmr.msra.gmra.mrb[4].mxu1 %v56_v15 }
 0x11b   :  { %v859_v16 = vpop.f32.mrb[0].mxu0 }
 0x11c   :  { %v881_v17 = vpop.f32.mrb[0].mxu1  ;;  %v860_v18 = vpop.f32.mrb[1].mxu0 }
 0x11d   :  { %v882_v19 = vpop.f32.mrb[1].mxu1  ;;  %v861_v20 = vadd.f32 %v860_v18, %v859_v16  ;;  %v862_v22 = vpop.f32.mrb[2].mxu0 }
 0x11e   :  { %v883_v21 = vadd.f32 %v882_v19, %v881_v17  ;;  %v884_v23 = vpop.f32.mrb[2].mxu1  ;;  %v863_v24 = vpop.f32.mrb[3].mxu0 }
 0x11f   :  { %v885_v25 = vpop.f32.mrb[3].mxu1 }
 0x120   :  { %v645_v26 = vadd.f32 %v883_v21, %v861_v20 }
 0x13b   :  { %v903_v27 = vpop.f32.mrb[4].mxu0 }
 0x13c   :  { %v925_v28 = vpop.f32.mrb[4].mxu1  ;;  %v904_v29 = vpop.f32.mrb[5].mxu0 }
 0x13d   :  { %v905_v30 = vadd.f32 %v904_v29, %v903_v27  ;;  %v926_v31 = vpop.f32.mrb[5].mxu1  ;;  %v906_v32 = vpop.f32.mrb[6].mxu0 }
 0x13e   :  { %v927_v33 = vadd.f32 %v926_v31, %v925_v28  ;;  %v928_v34 = vpop.f32.mrb[6].mxu1  ;;  %v907_v35 = vpop.f32.mrb[7].mxu0 }
 0x13f   :  { %v685_v36 = vadd.f32 %v905_v30, %v645_v26  ;;  %v929_v37 = vpop.f32.mrb[7].mxu1 }
 0x141   :  { %v725_v39 = vadd.f32 %v927_v33, %v685_v36 }
 0x143   :  { %v753_v40 = vadd.f32 %v841_v38, %v725_v39 }
 0x145   :  { %v842_v41 = vmul.f32 -1.442695, %v753_v40 }
 0x147   :  { %1000 = vpow2.f32 %v842_v41 }
 0x151   :  { %v1001_v42 = vpop.eup %1000 }
 0x152   :  { %v757_v43 = vadd.f32 1.0, %v1001_v42 }
 0x154   :  { %1002 = vrcp.f32 %v757_v43 }
 0x15e   :  { %v1003_v44 = vpop.eup %1002 }
 0x15f   :  { %760 = vst [vmem:[#allocation7] sm:$0xff] %v1003_v44 }
 0x160   :  { %1059 = shalt.err (!%p1056_p6)
}
 0x161   :  { %s1060_s15 = scalar_lea.hbm %s1150_s3, 128 }
 0x162   :  { %p1061_p7 = scmp.ne.s32.totalorder %s1150_s3, %s1060_s15  ;;  %p1064_p8 = scmp.lt.u32.totalorder %s1060_s15, %s1150_s3 }
 0x164   :  { %p1066_p9 = pnand %p1064_p8, %p1061_p7 }
 0x166   :  { %1069 = shalt.err (!%p1066_p9)
}
 0x167   :  { %770 = dma.vmem_to_hbm [thread:$0]  %s768_s12, 128, %s1150_s3, [#allocation4]  }
 0x168   :  { %1074 = dma.done.wait [#allocation4], 128  }
 0x169   :  { %1075 = vsyncadd [#allocation4], 4294967168 }
 0x16a   :  { %774 = vsyncpa [#allocation3], 1 }
 0x16b   :  { %775 = vsyncpa [#allocation6], 1 }
 0x16c   :  { %776 = vsyncpa [#allocation4], 1 }

</bundles_post_ra>
